<compile_context>
chip_gen: v6e
topology: v6e:2x2x1
jax: 0.10.0
libtpu: 0.0.40
codegen_flags: <defaults>
</compile_context>

<pallas_src>
import functools

import jax
import jax.numpy as jnp
from jax.experimental import pallas as pl
from jax.experimental.pallas import tpu as pltpu

_BLUR_W = [[1.0, 2.0, 1.0],
           [2.0, 4.0, 2.0],
           [1.0, 2.0, 1.0]]
_BLUR_SUM = 16.0


def _blur_kernel(mask_ref, x_ref, o_ref, *, w: int):
    """Blur one block of (n, c) slices, flattened spatially.

    mask_ref: (2, L) f32.  Row 0 = 1.0 where the flat position is NOT the
              first column of an image row, row 1 = 1.0 where it is NOT the
              last column (L = H*W).
    x_ref   : (B, L) input block — each row is one full (n, c) image slice.
    o_ref   : (B, L) output block.
    """
    x = x_ref[...].astype(jnp.float32)
    b, l = x.shape
    m = mask_ref[...]
    m_not_first = m[0:1, :]
    m_not_last = m[1:2, :]

    z1 = jnp.zeros((b, 1), jnp.float32)
    zw = jnp.zeros((b, w), jnp.float32)

    # Horizontal 1-2-1 pass: lane shifts by +-1; the masks zero the taps that
    # would leak across an image-row boundary (== conv zero padding in W).
    left = jnp.concatenate([z1, x[:, : l - 1]], axis=1) * m_not_first
    right = jnp.concatenate([x[:, 1:], z1], axis=1) * m_not_last
    t = left + 2.0 * x + right

    # Vertical 1-2-1 pass: the row above/below is +-W in the flat layout; the
    # zero fill at the ends is exactly the conv zero padding in H.  Rows never
    # leak across (n, c) slices because each slice is its own block row.
    up = jnp.concatenate([zw, t[:, : l - w]], axis=1)
    down = jnp.concatenate([t[:, w:], zw], axis=1)
    y = up + 2.0 * t + down

    # Single hoisted 1/16 scale, single unmasked store of the output tile.
    o_ref[...] = (y * (1.0 / _BLUR_SUM)).astype(o_ref.dtype)


def _pick_block_rows(nc: int, row_bytes: int, budget_bytes: int = 2 << 20) -> int:
    """Rows of the (N*C, H*W) array per grid step.

    Keep blocks sublane-aligned (multiple of 8 rows, or the full dim) and under
    a conservative f32 budget so double-buffered in+out blocks fit every
    generation's scoped VMEM (incl. v7x); prefer >= 2 grid steps so both v7x
    TensorCores get work when N*C allows it.
    """
    cands = [d for d in range(1, nc + 1)
             if nc % d == 0 and (d % 8 == 0 or d == nc)
             and d * row_bytes <= budget_bytes]
    if not cands:
        # TODO(synk): images whose single (H*W) row exceeds the VMEM budget need
        # spatial halo tiling (overlapping H blocks); not required at these sizes.
        return 1
    multi = [d for d in cands if nc // d >= 2]
    return max(multi) if multi else max(cands)


def blur(x):
    """Depthwise 3x3 binomial blur, padding=1.  x: (N, C, H, W)."""
    n, c, h, w = x.shape
    nc = n * c
    l = h * w

    # Free reshape of the contiguous NCHW array: each row is one (n, c) slice.
    x2 = x.reshape(nc, l)

    # Column-boundary masks, computed once (tiny; same block every grid step so
    # the pipeline does not re-fetch it).
    col = jnp.arange(l, dtype=jnp.int32) % w
    masks = jnp.stack([(col != 0), (col != w - 1)]).astype(jnp.float32)  # (2, L)

    bnc = _pick_block_rows(nc, l * 4)
    grid = (nc // bnc,)

    out = pl.pallas_call(
        functools.partial(_blur_kernel, w=w),
        out_shape=jax.ShapeDtypeStruct((nc, l), x.dtype),
        grid=grid,
        in_specs=[
            pl.BlockSpec((2, l), lambda i: (0, 0)),    # masks (replicated block)
            pl.BlockSpec((bnc, l), lambda i: (i, 0)),  # input rows
        ],
        out_specs=pl.BlockSpec((bnc, l), lambda i: (i, 0)),
        compiler_params=pltpu.CompilerParams(
            dimension_semantics=("parallel",)),
    )(masks, x2)

    return out.reshape(n, c, h, w)


def _blur_reference(x):
    """Pure-JAX reference: depthwise conv2d, padding=1, groups=C."""
    _, c, _, _ = x.shape
    k = jnp.array(_BLUR_W, dtype=jnp.float32) / _BLUR_SUM
    kern = jnp.broadcast_to(k[None, None], (c, 1, 3, 3))
    return jax.lax.conv_general_dilated(
        x.astype(jnp.float32), kern, window_strides=(1, 1),
        padding=((1, 1), (1, 1)),
        dimension_numbers=("NCHW", "OIHW", "NCHW"),
        feature_group_count=c).astype(x.dtype)


if __name__ == "__main__":
    key = jax.random.PRNGKey(0)
    N, C, H, W = 2, 4, 16, 16
    x = jax.random.normal(key, (N, C, H, W), dtype=jnp.float32)

    y = jax.block_until_ready(blur(x))
    y_ref = _blur_reference(x)

    assert y.shape == (N, C, H, W)
    assert jnp.allclose(y, y_ref, atol=1e-5, rtol=1e-5)

    print("KERNEL_OK")
</pallas_src>

<mosaic_0001>
module attributes {stable_mosaic.version = 11 : i64} {
  func.func @_blur_kernel(%arg0: i32, %arg1: memref<2x256xf32, #tpu.memory_space<vmem>>, %arg2: memref<8x256xf32, #tpu.memory_space<vmem>>, %arg3: memref<8x256xf32, #tpu.memory_space<vmem>>) attributes {dimension_semantics = [#tpu.dimension_semantics<parallel>], iteration_bounds = array<i64: 1>, scalar_prefetch = 0 : i64, scratch_operands = 0 : i64, tpu.core_type = #tpu.core_type<tc>, window_params = [{pipeline_mode = #tpu.pipeline_mode<synchronous>, transform_indices = @transform_0, window_bounds = array<i64: 2, 256>}, {transform_indices = @transform_1, window_bounds = array<i64: 8, 256>}, {transform_indices = @transform_2, window_bounds = array<i64: 8, 256>}]} {
    %c0 = arith.constant 0 : index
    %c0_0 = arith.constant 0 : index
    %0 = vector.load %arg2[%c0, %c0_0] : memref<8x256xf32, #tpu.memory_space<vmem>>, vector<8x256xf32>
    %c0_1 = arith.constant 0 : index
    %c0_2 = arith.constant 0 : index
    %1 = vector.load %arg1[%c0_1, %c0_2] : memref<2x256xf32, #tpu.memory_space<vmem>>, vector<2x256xf32>
    %2 = vector.extract_strided_slice %1 {offsets = [0, 0], sizes = [1, 256], strides = [1, 1]} : vector<2x256xf32> to vector<1x256xf32>
    %3 = vector.extract_strided_slice %1 {offsets = [1, 0], sizes = [1, 256], strides = [1, 1]} : vector<2x256xf32> to vector<1x256xf32>
    %cst = arith.constant 0.000000e+00 : f32
    %4 = vector.broadcast %cst : f32 to vector<8x1xf32>
    %cst_3 = arith.constant 0.000000e+00 : f32
    %5 = vector.broadcast %cst_3 : f32 to vector<8x16xf32>
    %6 = vector.extract_strided_slice %0 {offsets = [0, 0], sizes = [8, 255], strides = [1, 1]} : vector<8x256xf32> to vector<8x255xf32>
    %7 = tpu.concatenate %4, %6 in 1 : vector<8x1xf32>, vector<8x255xf32> -> vector<8x256xf32>
    %8 = vector.broadcast %2 : vector<1x256xf32> to vector<8x256xf32>
    %9 = arith.mulf %7, %8 : vector<8x256xf32>
    %10 = vector.extract_strided_slice %0 {offsets = [0, 1], sizes = [8, 255], strides = [1, 1]} : vector<8x256xf32> to vector<8x255xf32>
    %11 = tpu.concatenate %10, %4 in 1 : vector<8x255xf32>, vector<8x1xf32> -> vector<8x256xf32>
    %12 = vector.broadcast %3 : vector<1x256xf32> to vector<8x256xf32>
    %13 = arith.mulf %11, %12 : vector<8x256xf32>
    %cst_4 = arith.constant 2.000000e+00 : f32
    %14 = vector.broadcast %cst_4 : f32 to vector<8x256xf32>
    %15 = arith.mulf %14, %0 : vector<8x256xf32>
    %16 = arith.addf %9, %15 : vector<8x256xf32>
    %17 = arith.addf %16, %13 : vector<8x256xf32>
    %18 = vector.extract_strided_slice %17 {offsets = [0, 0], sizes = [8, 240], strides = [1, 1]} : vector<8x256xf32> to vector<8x240xf32>
    %19 = tpu.concatenate %5, %18 in 1 : vector<8x16xf32>, vector<8x240xf32> -> vector<8x256xf32>
    %20 = vector.extract_strided_slice %17 {offsets = [0, 16], sizes = [8, 240], strides = [1, 1]} : vector<8x256xf32> to vector<8x240xf32>
    %21 = tpu.concatenate %20, %5 in 1 : vector<8x240xf32>, vector<8x16xf32> -> vector<8x256xf32>
    %cst_5 = arith.constant 2.000000e+00 : f32
    %22 = vector.broadcast %cst_5 : f32 to vector<8x256xf32>
    %23 = arith.mulf %22, %17 : vector<8x256xf32>
    %24 = arith.addf %19, %23 : vector<8x256xf32>
    %25 = arith.addf %24, %21 : vector<8x256xf32>
    %cst_6 = arith.constant 6.250000e-02 : f32
    %26 = vector.broadcast %cst_6 : f32 to vector<8x256xf32>
    %27 = arith.mulf %25, %26 : vector<8x256xf32>
    %c0_7 = arith.constant 0 : index
    %c0_8 = arith.constant 0 : index
    %28 = vector.load %arg3[%c0_7, %c0_8] : memref<8x256xf32, #tpu.memory_space<vmem>>, vector<8x256xf32>
    tpu.vector_store %arg3[%c0_7, %c0_8], %27 {strides = array<i32>} : memref<8x256xf32, #tpu.memory_space<vmem>>, vector<8x256xf32>,
    return
  }
  func.func @transform_0(%arg0: i32) -> (i32, i32) {
    %c0_i32 = arith.constant 0 : i32
    %c0_i32_0 = arith.constant 0 : i32
    %c0_i32_1 = arith.constant 0 : i32
    return %c0_i32, %c0_i32_0 : i32, i32
  }
  func.func @transform_1(%arg0: i32) -> (i32, i32) {
    %c0_i32 = arith.constant 0 : i32
    %c0_i32_0 = arith.constant 0 : i32
    return %arg0, %c0_i32 : i32, i32
  }
  func.func @transform_2(%arg0: i32) -> (i32, i32) {
    %c0_i32 = arith.constant 0 : i32
    %c0_i32_0 = arith.constant 0 : i32
    return %arg0, %c0_i32 : i32, i32
  }
}

</mosaic_0001>

<bundles_post_ra>
// kernel: tpu_custom_call.1
= control target key start
LH: loop header
LB: loop body
LE: loop exit
PB: predicated region body
PF: predicated region fallthrough
CT: control target
= control target key end

     0   :  { %7 = vsyncpa [#allocation3], 0  ;;  %s258_s0 = inlined_call_operand.hbm [shape: f32[2,256], index: 0, kind: input, shape index: {}]   ;;  %s259_s1 = inlined_call_operand.hbm [shape: f32[8,256], index: 1, kind: input, shape index: {}]   ;;  %s260_s2 = inlined_call_operand.hbm [shape: f32[8,256], index: 2, kind: output, shape index: {}]  }
   0x1   :  { %8 = vsyncpa [#allocation6], 0 }
   0x2   :  { %9 = vsyncpa [#allocation4], 0  ;;  %s225_s9 = smov [#allocation2]   ;;  %s226_s11 = smov [#allocation5]  }
   0x3   :  { %s16_s10 = sshll.u32 %s225_s9, 4  ;;  %s26_s12 = sshll.u32 %s226_s11, 4  ;;  %s17_s10 = int_to_ptr.vmem [resolvable:$true] %s16_s10  ;;  %s27_s12 = int_to_ptr.vmem [resolvable:$true] %s26_s12 }
   0x4   :  { %s167_s13 = scalar_lea.vmem %s17_s10, 64  ;;  %p172_p1 = scmp.lt.s32.totalorder %s17_s10, %s17_s10 }
   0x5   :  { %p168_p0 = scmp.ne.s32.totalorder %s17_s10, %s167_s13  ;;  %p173_p2 = scmp.lt.s32.totalorder %s167_s13, %s167_s13 }
   0x7   :  { %p174_p3 = por %p173_p2, %p172_p1 }
   0x9   :  { %p175_p4 = pnand %p174_p3, %p168_p0 }
   0xb   :  { %178 = shalt.err (!%p175_p4)
}
   0xc   :  { %19 = dma.hbm_to_vmem [thread:$0]  %s258_s0, 64, %s17_s10, [#allocation3]  }
   0xd   :  { %s187_s16 = scalar_lea.vmem %s27_s12, 256  ;;  %p192_p6 = scmp.lt.s32.totalorder %s27_s12, %s27_s12 }
   0xe   :  { %p188_p5 = scmp.ne.s32.totalorder %s27_s12, %s187_s16  ;;  %p193_p7 = scmp.lt.s32.totalorder %s187_s16, %s187_s16 }
  0x10   :  { %p194_p8 = por %p193_p7, %p192_p6 }
  0x12   :  { %p195_p9 = pnand %p194_p8, %p188_p5 }
  0x14   :  { %198 = shalt.err (!%p195_p9)
}
  0x15   :  { %29 = dma.hbm_to_vmem [thread:$0]  %s259_s1, 256, %s27_s12, [#allocation6]  }
  0x16   :  { %219 = dma.done.wait [#allocation3], 64  }
  0x17   :  { %220 = vsyncadd [#allocation3], 4294967232 }
  0x18   :  { %221 = dma.done.wait [#allocation6], 256  }
  0x19   :  { %222 = vsyncadd [#allocation6], 4294967040  ;;  %v36_v0 = vld [vmem:[#allocation5] sm:$0xff]  ;;  %s227_s19 = smov 127   ;;  %s228_s20 = smov 1   ;;  %v37_v1 = vld [vmem:[#allocation5 + $0x8] sm:$0xff]  ;;  %v51_v2 = vlaneseq }
  0x1a   :  { %71 = vrot.lane.b32.xlu1 %v36_v0, %s227_s19  ;;  %41 = vrot.lane.b32.xlu0 %v36_v0, %s228_s20  ;;  %v38_v5 = vld [vmem:[#allocation2] sm:$0xf]  ;;  %vm45_vm0 = vcmask 7168   ;;  %v100_v16 = vmul.f32 2.0, %v36_v0  ;;  %vm75_vm1 = vcmask 1039360   ;;  %v101_v22 = vmul.f32 2.0, %v37_v1 }
  0x1b   :  { %v52_v3 = vshrl.u32 %v51_v2, 7  ;;  %s229_s0 = smov 16   ;;  %s230_s1 = smov 112   ;;  %vm112_vm2 = vcmask 130048   ;;  %vm121_vm3 = vcmask 916480  }
  0x1c   :  { %s231_s21 = smov [#allocation7]  }
  0x1d   :  { %v53_v4 = vsub.s32 0, %v52_v3  ;;  %v82_v7 = vsub.s32 1, %v52_v3  ;;  %v86_v8 = vsub.s32 3, %v52_v3  ;;  %v57_v9 = vsub.s32 2, %v52_v3  ;;  %s142_s22 = sshll.u32 %s231_s21, 4  ;;  %s143_s22 = int_to_ptr.vmem [resolvable:$true] %s142_s22 }
  0x1e   :  { %73 = vrot.lane.b32.xlu1 %v37_v1, %s227_s19  ;;  %43 = vrot.lane.b32.xlu0 %v37_v1, %s228_s20  ;;  %s199_s23 = scalar_lea.vmem %s143_s22, 256  ;;  %p204_p11 = scmp.lt.s32.totalorder %s143_s22, %s143_s22 }
  0x1f   :  { %v54_v6 = vrot.slane %v38_v5, %v53_v4  ;;  %v83_v11 = vrot.slane %v38_v5, %v82_v7  ;;  %v87_v12 = vrot.slane %v38_v5, %v86_v8  ;;  %v58_v13 = vrot.slane %v38_v5, %v57_v9  ;;  %p200_p10 = scmp.ne.s32.totalorder %s143_s22, %s199_s23  ;;  %p205_p12 = scmp.lt.s32.totalorder %s199_s23, %s199_s23 }
  0x21   :  { %v64_v10 = vrot.slane %v54_v6, %v53_v4  ;;  %v93_v19 = vrot.slane %v83_v11, %v82_v7  ;;  %v97_v20 = vrot.slane %v87_v12, %v82_v7  ;;  %v68_v21 = vrot.slane %v58_v13, %v53_v4  ;;  %p206_p13 = por %p205_p12, %p204_p11 }
  0x23   :  { %p207_p0 = pnand %p206_p13, %p200_p10 }
  0x8c   :  { %v72_v14 = vpop.permute.xlu1 %71  ;;  %v42_v15 = vpop.permute.xlu0 %41 }
  0x8d   :  { %v49_v17 = vsel %vm45_vm0, 0.0, %v42_v15 }
  0x8e   :  { %v69_v18 = vmul.f32 %v64_v10, %v49_v17 }
  0x90   :  { %v74_v23 = vpop.permute.xlu1 %73  ;;  %v44_v24 = vpop.permute.xlu0 %43  ;;  %v102_v28 = vadd.f32 %v100_v16, %v69_v18 }
  0x91   :  { %v76_v25 = vsel %vm75_vm1, %v72_v14, %v74_v23  ;;  %v79_v26 = vsel %vm75_vm1, %v74_v23, 0.0  ;;  %v46_v27 = vsel %vm45_vm0, %v42_v15, %v44_v24 }
  0x92   :  { %v98_v29 = vmul.f32 %v93_v19, %v76_v25  ;;  %v99_v30 = vmul.f32 %v97_v20, %v79_v26  ;;  %v70_v31 = vmul.f32 %v68_v21, %v46_v27 }
  0x94   :  { %v103_v32 = vadd.f32 %v101_v22, %v70_v31  ;;  %v104_v33 = vadd.f32 %v102_v28, %v98_v29 }
  0x96   :  { %108 = vrot.lane.b32.xlu0 %v104_v33, %s229_s0  ;;  %v105_v34 = vadd.f32 %v103_v32, %v99_v30  ;;  %v126_v39 = vmul.f32 2.0, %v104_v33 }
  0x98   :  { %110 = vrot.lane.b32.xlu1 %v105_v34, %s229_s0  ;;  %v127_v40 = vmul.f32 2.0, %v105_v34 }
  0x9a   :  { %117 = vrot.lane.b32.xlu0 %v104_v33, %s230_s1 }
  0x9c   :  { %119 = vrot.lane.b32.xlu1 %v105_v34, %s230_s1 }
 0x108   :  { %v109_v35 = vpop.permute.xlu0 %108 }
 0x109   :  { %v116_v37 = vsel %vm112_vm2, 0.0, %v109_v35 }
 0x10a   :  { %v111_v36 = vpop.permute.xlu1 %110  ;;  %v128_v41 = vadd.f32 %v126_v39, %v116_v37 }
 0x10b   :  { %v113_v38 = vsel %vm112_vm2, %v109_v35, %v111_v36 }
 0x10c   :  { %v129_v42 = vadd.f32 %v127_v40, %v113_v38  ;;  %v118_v43 = vpop.permute.xlu0 %117 }
 0x10e   :  { %v120_v44 = vpop.permute.xlu1 %119 }
 0x10f   :  { %v122_v45 = vsel %vm121_vm3, %v118_v43, %v120_v44  ;;  %v125_v46 = vsel %vm121_vm3, %v120_v44, 0.0 }
 0x110   :  { %v130_v47 = vadd.f32 %v128_v41, %v122_v45  ;;  %v131_v48 = vadd.f32 %v129_v42, %v125_v46 }
 0x112   :  { %v132_v49 = vmul.f32 0.0625, %v130_v47  ;;  %v133_v50 = vmul.f32 0.0625, %v131_v48 }
 0x114   :  { %134 = vst [vmem:[#allocation7] sm:$0xff] %v132_v49  ;;  %135 = vst [vmem:[#allocation7 + $0x8] sm:$0xff] %v133_v50 }
 0x115   :  { %210 = shalt.err (!%p207_p0)
}
 0x116   :  { %145 = dma.vmem_to_hbm [thread:$0]  %s143_s22, 256, %s260_s2, [#allocation4]  }
 0x117   :  { %223 = dma.done.wait [#allocation4], 256  }
 0x118   :  { %224 = vsyncadd [#allocation4], 4294967040 }
 0x119   :  { %149 = vsyncpa [#allocation3], 1 }
 0x11a   :  { %150 = vsyncpa [#allocation6], 1 }
 0x11b   :  { %151 = vsyncpa [#allocation4], 1 }

</bundles_post_ra>
